<compile_context>
chip_gen: v5e
topology: v5e:2x2
jax: 0.10.0
libtpu: 0.0.40
codegen_flags: <defaults>
</compile_context>

<pallas_src>
import math

import jax
import jax.numpy as jnp
import numpy as np
from jax.experimental import pallas as pl
from jax.experimental.pallas import tpu as pltpu  # noqa: F401  (TPU backend)

_OUT_LANES = 128  # lane-dense output width (result read from column 0)


# ----------------------------------------------------------------------------
# _regularizer: scalar (Python float) accuracy-gap gating, exactly as in torch.
# Pure scalar control flow on host-side accuracy values -> stays in Python.
# ----------------------------------------------------------------------------
def _regularizer(loss1, loss2, beta=2.0, thresold=1e-05, method='exp'):
    def _sigmoid(x):
        return 1.0 / (1.0 + math.exp(-x))

    d = loss1 - loss2
    if method == 'exp':
        return beta * math.exp(d) - 1 if d > 0 + thresold else 0.0
    elif method == 'switch':
        return d * _sigmoid(beta * d) if d > 0 + thresold else 0.0
    elif method == 'identity':
        return beta * d if d > 0 + thresold else 0.0
    elif method == 'multiply':
        return beta * math.exp(d) - 1 if d > 0 + thresold else 0.0
    elif method == 'exp_in':
        return math.exp(beta * d) - 1 if d > 0 + thresold else 0.0
    elif method == 'bi_exp':
        return beta * math.exp(d) - 1
    elif method == 'bi_switch':
        return d * _sigmoid(beta * d)
    elif method == 'bi_exp_in':
        return 2 * math.exp(beta * d) - 1 if d > 0 + thresold else 0.0
    elif method == 'bibi_exp_in':
        return 2 * math.exp(beta * d) - 1
    elif method == 'log':
        return math.log(beta * d + 1) if d > 0 + thresold else 0.0


# ----------------------------------------------------------------------------
# Fused Pallas kernel: one invocation computes all pairwise correlation-diff
# Frobenius norms (via the Gram identity) and the focal-weighted per-modality
# SSA losses.
#   x_ref     : (M, B, D) f32   stacked modality features
#   focal_ref : (M, M)    f32   host-computed accuracy-gap weights
#   out_ref   : (M, 128)  f32   ssa loss per modality, broadcast across lanes
# ----------------------------------------------------------------------------
def _ssa_fused_kernel(x_ref, focal_ref, out_ref):
    M, B, D = x_ref.shape
    eps = jnp.float32(1e-12)

    x = x_ref[...]                                          # (M, B, D)
    # F.normalize(x, p=2, dim=1, eps=1e-12): x / max(||x||_2, eps) per row,
    # done exactly once per modality.
    sq = jnp.sum(x * x, axis=-1, keepdims=True)             # (M, B, 1)
    xn = x / jnp.maximum(jnp.sqrt(sq), eps)                 # (M, B, D)

    xs = [xn[m] for m in range(M)]                          # each (B, D)
    # squared row norms of the *normalized* rows (== 1 up to rounding / eps case)
    s2 = [jnp.square(jnp.sum(xm * xm, axis=-1, keepdims=True)) for xm in xs]

    # corr_diff[m, n] = sqrt(1e-12 + sum_b ||x_m[b] x_m[b]^T - x_n[b] x_n[b]^T||_F^2)
    # using ||a a^T - b b^T||_F^2 = ||a||^4 + ||b||^4 - 2 (a.b)^2.
    # Symmetric; diagonal difference is exactly zero -> sqrt(1e-12).
    diag = jnp.sqrt(jnp.full((1, 1), eps, jnp.float32))     # (1, 1)
    cd = [[None] * M for _ in range(M)]
    for m in range(M):
        cd[m][m] = diag
        for n in range(m + 1, M):
            g = jnp.sum(xs[m] * xs[n], axis=-1, keepdims=True)    # (B, 1)
            term = s2[m] + s2[n] - 2.0 * (g * g)                  # (B, 1)
            ssq = jnp.sum(term, axis=0, keepdims=True)            # (1, 1)
            ssq = jnp.maximum(ssq, jnp.float32(0.0))              # cancellation guard
            val = jnp.sqrt(eps + ssq)                             # (1, 1)
            cd[m][n] = val
            cd[n][m] = val

    # Focal-weighted row sums -> per-modality SSA loss; lane-dense stores.
    focal = focal_ref[...]                                  # (M, M)
    for m in range(M):
        acc = jnp.zeros((1, 1), jnp.float32)
        for n in range(M):
            acc = acc + focal[m:m + 1, n:n + 1] * cd[m][n]
        out_ref[m:m + 1, :] = jnp.broadcast_to(acc, (1, out_ref.shape[1]))


def ssa_losses(x_stacked, focal):
    """x_stacked: [M, B, D] f32, focal: [M, M] f32 -> [M] per-modality SSA loss."""
    M, B, D = x_stacked.shape
    out = pl.pallas_call(
        _ssa_fused_kernel,
        out_shape=jax.ShapeDtypeStruct((M, _OUT_LANES), jnp.float32),
        # no grid: single invocation, whole arrays resident in VMEM
    )(x_stacked, focal)
    return out[:, 0]


# ----------------------------------------------------------------------------
# Module-equivalent wrapper
# ----------------------------------------------------------------------------
class ACCSSALoss:
    def __init__(self, requirements, beta, lamda, threshold, reg_method):
        self.requirments = list(requirements)
        self.beta = beta
        self.lamda = lamda
        self.threshold = threshold
        self.reg_method = reg_method

    def __call__(self, dict_loss, dict_x, dict_acc):
        reqs = self.requirments
        M = len(reqs)

        # Host-side scalar accuracy gating (Python floats, same as torch module).
        focal_np = np.zeros((M, M), np.float32)
        for mi, m in enumerate(reqs):
            for ni, n in enumerate(reqs):
                focal_np[mi, ni] = _regularizer(dict_acc[m], dict_acc[n],
                                                self.beta, self.threshold,
                                                self.reg_method)
        focal = jnp.asarray(focal_np)

        x_stacked = jnp.stack([dict_x[r] for r in reqs], axis=0).astype(jnp.float32)
        ssa = ssa_losses(x_stacked, focal)          # [M], one kernel launch

        dict_ssa_loss = {m: ssa[mi] for mi, m in enumerate(reqs)}
        total_loss = {'ssaloss': dict_ssa_loss, 'total_loss': {}}
        for r in reqs:
            total_loss['total_loss'][r] = dict_loss[r] + self.lamda * dict_ssa_loss[r]
        return total_loss


# ----------------------------------------------------------------------------
# Pure-numpy reference of the PyTorch forward (for verification)
# ----------------------------------------------------------------------------
def _reference(dict_loss, dict_x_np, dict_acc, reqs, beta, lamda, thr, method):
    corr = {}
    for r in reqs:
        x = dict_x_np[r].astype(np.float64)
        nrm = np.sqrt((x * x).sum(axis=1, keepdims=True))
        xn = x / np.maximum(nrm, 1e-12)
        corr[r] = np.einsum('bi,bj->bij', xn, xn)
    ssa = {}
    for m in reqs:
        s = 0.0
        for n in reqs:
            focal = _regularizer(dict_acc[m], dict_acc[n], beta, thr, method)
            cd = math.sqrt(1e-12 + ((corr[m] - corr[n]) ** 2).sum())
            s += focal * cd
        ssa[m] = s
    tot = {r: dict_loss[r] + lamda * ssa[r] for r in reqs}
    return ssa, tot


if __name__ == "__main__":
    reqs = ['rgb', 'depth', 'flow']
    B, D = 2, 32

    key = jax.random.PRNGKey(0)
    keys = jax.random.split(key, len(reqs))
    dict_x = {r: jax.random.normal(k, (B, D), dtype=jnp.float32)
              for r, k in zip(reqs, keys)}
    dict_acc = {'rgb': 0.82, 'depth': 0.61, 'flow': 0.74}     # scalar accuracies
    dict_loss = {'rgb': 1.25, 'depth': 1.57, 'flow': 1.33}    # scalar CE losses

    module = ACCSSALoss(reqs, beta=2.0, lamda=0.1, threshold=1e-5, reg_method='exp')
    out = module(dict_loss, dict_x, dict_acc)

    for r in reqs:
        jax.block_until_ready(out['ssaloss'][r])
        jax.block_until_ready(out['total_loss'][r])

    # Verify against the numpy reference of the PyTorch semantics.
    dict_x_np = {r: np.asarray(dict_x[r]) for r in reqs}
    ref_ssa, ref_tot = _reference(dict_loss, dict_x_np, dict_acc, reqs,
                                  2.0, 0.1, 1e-5, 'exp')
    for r in reqs:
        np.testing.assert_allclose(float(out['ssaloss'][r]), ref_ssa[r],
                                   rtol=1e-4, atol=1e-5)
        np.testing.assert_allclose(float(out['total_loss'][r]), ref_tot[r],
                                   rtol=1e-4, atol=1e-5)

    print("KERNEL_OK")
</pallas_src>

<mosaic_0001>
module attributes {stable_mosaic.version = 11 : i64} {
  func.func @_ssa_fused_kernel(%arg0: memref<3x2x32xf32, #tpu.memory_space<vmem>>, %arg1: memref<3x3xf32, #tpu.memory_space<vmem>>, %arg2: memref<3x128xf32, #tpu.memory_space<vmem>>) attributes {dimension_semantics = [], scalar_prefetch = 0 : i64, scratch_operands = 0 : i64, tpu.core_type = #tpu.core_type<tc>} {
    %c0 = arith.constant 0 : index
    %c0_0 = arith.constant 0 : index
    %c0_1 = arith.constant 0 : index
    %0 = vector.load %arg0[%c0, %c0_0, %c0_1] : memref<3x2x32xf32, #tpu.memory_space<vmem>>, vector<3x2x32xf32>
    %1 = arith.mulf %0, %0 : vector<3x2x32xf32>
    %cst = arith.constant dense<0.000000e+00> : vector<3x2xf32>
    %2 = vector.multi_reduction <add>, %1, %cst [2] : vector<3x2x32xf32> to vector<3x2xf32>
    %3 = vector.shape_cast %2 : vector<3x2xf32> to vector<3x2x1xf32>
    %4 = math.sqrt %3 : vector<3x2x1xf32>
    %cst_2 = arith.constant 9.99999996E-13 : f32
    %5 = vector.broadcast %cst_2 : f32 to vector<3x2x1xf32>
    %6 = arith.maximumf %4, %5 : vector<3x2x1xf32>
    %7 = vector.broadcast %6 : vector<3x2x1xf32> to vector<3x2x32xf32>
    %8 = arith.divf %0, %7 : vector<3x2x32xf32>
    %9 = vector.extract_strided_slice %8 {offsets = [0, 0, 0], sizes = [1, 2, 32], strides = [1, 1, 1]} : vector<3x2x32xf32> to vector<1x2x32xf32>
    %10 = vector.shape_cast %9 : vector<1x2x32xf32> to vector<2x32xf32>
    %11 = vector.extract_strided_slice %8 {offsets = [1, 0, 0], sizes = [1, 2, 32], strides = [1, 1, 1]} : vector<3x2x32xf32> to vector<1x2x32xf32>
    %12 = vector.shape_cast %11 : vector<1x2x32xf32> to vector<2x32xf32>
    %13 = vector.extract_strided_slice %8 {offsets = [2, 0, 0], sizes = [1, 2, 32], strides = [1, 1, 1]} : vector<3x2x32xf32> to vector<1x2x32xf32>
    %14 = vector.shape_cast %13 : vector<1x2x32xf32> to vector<2x32xf32>
    %15 = arith.mulf %10, %10 : vector<2x32xf32>
    %cst_3 = arith.constant dense<0.000000e+00> : vector<2xf32>
    %16 = vector.multi_reduction <add>, %15, %cst_3 [1] : vector<2x32xf32> to vector<2xf32>
    %17 = vector.shape_cast %16 : vector<2xf32> to vector<2x1xf32>
    %18 = arith.mulf %17, %17 : vector<2x1xf32>
    %19 = arith.mulf %12, %12 : vector<2x32xf32>
    %cst_4 = arith.constant dense<0.000000e+00> : vector<2xf32>
    %20 = vector.multi_reduction <add>, %19, %cst_4 [1] : vector<2x32xf32> to vector<2xf32>
    %21 = vector.shape_cast %20 : vector<2xf32> to vector<2x1xf32>
    %22 = arith.mulf %21, %21 : vector<2x1xf32>
    %23 = arith.mulf %14, %14 : vector<2x32xf32>
    %cst_5 = arith.constant dense<0.000000e+00> : vector<2xf32>
    %24 = vector.multi_reduction <add>, %23, %cst_5 [1] : vector<2x32xf32> to vector<2xf32>
    %25 = vector.shape_cast %24 : vector<2xf32> to vector<2x1xf32>
    %26 = arith.mulf %25, %25 : vector<2x1xf32>
    %cst_6 = arith.constant 9.99999996E-13 : f32
    %27 = vector.broadcast %cst_6 : f32 to vector<1x1xf32>
    %28 = math.sqrt %27 : vector<1x1xf32>
    %29 = arith.mulf %10, %12 : vector<2x32xf32>
    %cst_7 = arith.constant dense<0.000000e+00> : vector<2xf32>
    %30 = vector.multi_reduction <add>, %29, %cst_7 [1] : vector<2x32xf32> to vector<2xf32>
    %31 = vector.shape_cast %30 : vector<2xf32> to vector<2x1xf32>
    %32 = arith.addf %18, %22 : vector<2x1xf32>
    %33 = arith.mulf %31, %31 : vector<2x1xf32>
    %cst_8 = arith.constant 2.000000e+00 : f32
    %34 = vector.broadcast %cst_8 : f32 to vector<2x1xf32>
    %35 = arith.mulf %34, %33 : vector<2x1xf32>
    %36 = arith.subf %32, %35 : vector<2x1xf32>
    %cst_9 = arith.constant dense<0.000000e+00> : vector<1xf32>
    %37 = vector.multi_reduction <add>, %36, %cst_9 [0] : vector<2x1xf32> to vector<1xf32>
    %38 = vector.shape_cast %37 : vector<1xf32> to vector<1x1xf32>
    %cst_10 = arith.constant 0.000000e+00 : f32
    %39 = vector.broadcast %cst_10 : f32 to vector<1x1xf32>
    %40 = arith.maximumf %38, %39 : vector<1x1xf32>
    %cst_11 = arith.constant 9.99999996E-13 : f32
    %41 = vector.broadcast %cst_11 : f32 to vector<1x1xf32>
    %42 = arith.addf %41, %40 : vector<1x1xf32>
    %43 = math.sqrt %42 : vector<1x1xf32>
    %44 = arith.mulf %10, %14 : vector<2x32xf32>
    %cst_12 = arith.constant dense<0.000000e+00> : vector<2xf32>
    %45 = vector.multi_reduction <add>, %44, %cst_12 [1] : vector<2x32xf32> to vector<2xf32>
    %46 = vector.shape_cast %45 : vector<2xf32> to vector<2x1xf32>
    %47 = arith.addf %18, %26 : vector<2x1xf32>
    %48 = arith.mulf %46, %46 : vector<2x1xf32>
    %cst_13 = arith.constant 2.000000e+00 : f32
    %49 = vector.broadcast %cst_13 : f32 to vector<2x1xf32>
    %50 = arith.mulf %49, %48 : vector<2x1xf32>
    %51 = arith.subf %47, %50 : vector<2x1xf32>
    %cst_14 = arith.constant dense<0.000000e+00> : vector<1xf32>
    %52 = vector.multi_reduction <add>, %51, %cst_14 [0] : vector<2x1xf32> to vector<1xf32>
    %53 = vector.shape_cast %52 : vector<1xf32> to vector<1x1xf32>
    %cst_15 = arith.constant 0.000000e+00 : f32
    %54 = vector.broadcast %cst_15 : f32 to vector<1x1xf32>
    %55 = arith.maximumf %53, %54 : vector<1x1xf32>
    %cst_16 = arith.constant 9.99999996E-13 : f32
    %56 = vector.broadcast %cst_16 : f32 to vector<1x1xf32>
    %57 = arith.addf %56, %55 : vector<1x1xf32>
    %58 = math.sqrt %57 : vector<1x1xf32>
    %59 = arith.mulf %12, %14 : vector<2x32xf32>
    %cst_17 = arith.constant dense<0.000000e+00> : vector<2xf32>
    %60 = vector.multi_reduction <add>, %59, %cst_17 [1] : vector<2x32xf32> to vector<2xf32>
    %61 = vector.shape_cast %60 : vector<2xf32> to vector<2x1xf32>
    %62 = arith.addf %22, %26 : vector<2x1xf32>
    %63 = arith.mulf %61, %61 : vector<2x1xf32>
    %cst_18 = arith.constant 2.000000e+00 : f32
    %64 = vector.broadcast %cst_18 : f32 to vector<2x1xf32>
    %65 = arith.mulf %64, %63 : vector<2x1xf32>
    %66 = arith.subf %62, %65 : vector<2x1xf32>
    %cst_19 = arith.constant dense<0.000000e+00> : vector<1xf32>
    %67 = vector.multi_reduction <add>, %66, %cst_19 [0] : vector<2x1xf32> to vector<1xf32>
    %68 = vector.shape_cast %67 : vector<1xf32> to vector<1x1xf32>
    %cst_20 = arith.constant 0.000000e+00 : f32
    %69 = vector.broadcast %cst_20 : f32 to vector<1x1xf32>
    %70 = arith.maximumf %68, %69 : vector<1x1xf32>
    %cst_21 = arith.constant 9.99999996E-13 : f32
    %71 = vector.broadcast %cst_21 : f32 to vector<1x1xf32>
    %72 = arith.addf %71, %70 : vector<1x1xf32>
    %73 = math.sqrt %72 : vector<1x1xf32>
    %c0_22 = arith.constant 0 : index
    %c0_23 = arith.constant 0 : index
    %74 = vector.load %arg1[%c0_22, %c0_23] : memref<3x3xf32, #tpu.memory_space<vmem>>, vector<3x3xf32>
    %cst_24 = arith.constant 0.000000e+00 : f32
    %75 = vector.broadcast %cst_24 : f32 to vector<1x1xf32>
    %76 = vector.extract_strided_slice %74 {offsets = [0, 0], sizes = [1, 1], strides = [1, 1]} : vector<3x3xf32> to vector<1x1xf32>
    %77 = arith.mulf %76, %28 : vector<1x1xf32>
    %78 = arith.addf %75, %77 : vector<1x1xf32>
    %79 = vector.extract_strided_slice %74 {offsets = [0, 1], sizes = [1, 1], strides = [1, 1]} : vector<3x3xf32> to vector<1x1xf32>
    %80 = arith.mulf %79, %43 : vector<1x1xf32>
    %81 = arith.addf %78, %80 : vector<1x1xf32>
    %82 = vector.extract_strided_slice %74 {offsets = [0, 2], sizes = [1, 1], strides = [1, 1]} : vector<3x3xf32> to vector<1x1xf32>
    %83 = arith.mulf %82, %58 : vector<1x1xf32>
    %84 = arith.addf %81, %83 : vector<1x1xf32>
    %85 = vector.shape_cast %84 : vector<1x1xf32> to vector<1x1xf32>
    %86 = vector.broadcast %85 : vector<1x1xf32> to vector<1x128xf32>
    %c0_25 = arith.constant 0 : index
    %c0_26 = arith.constant 0 : index
    %87 = vector.load %arg2[%c0_25, %c0_26] : memref<3x128xf32, #tpu.memory_space<vmem>>, vector<1x128xf32>
    tpu.vector_store %arg2[%c0_25, %c0_26], %86 {strides = array<i32>} : memref<3x128xf32, #tpu.memory_space<vmem>>, vector<1x128xf32>,
    %cst_27 = arith.constant 0.000000e+00 : f32
    %88 = vector.broadcast %cst_27 : f32 to vector<1x1xf32>
    %89 = vector.extract_strided_slice %74 {offsets = [1, 0], sizes = [1, 1], strides = [1, 1]} : vector<3x3xf32> to vector<1x1xf32>
    %90 = arith.mulf %89, %43 : vector<1x1xf32>
    %91 = arith.addf %88, %90 : vector<1x1xf32>
    %92 = vector.extract_strided_slice %74 {offsets = [1, 1], sizes = [1, 1], strides = [1, 1]} : vector<3x3xf32> to vector<1x1xf32>
    %93 = arith.mulf %92, %28 : vector<1x1xf32>
    %94 = arith.addf %91, %93 : vector<1x1xf32>
    %95 = vector.extract_strided_slice %74 {offsets = [1, 2], sizes = [1, 1], strides = [1, 1]} : vector<3x3xf32> to vector<1x1xf32>
    %96 = arith.mulf %95, %73 : vector<1x1xf32>
    %97 = arith.addf %94, %96 : vector<1x1xf32>
    %98 = vector.shape_cast %97 : vector<1x1xf32> to vector<1x1xf32>
    %99 = vector.broadcast %98 : vector<1x1xf32> to vector<1x128xf32>
    %c1 = arith.constant 1 : index
    %c0_28 = arith.constant 0 : index
    %100 = vector.load %arg2[%c1, %c0_28] : memref<3x128xf32, #tpu.memory_space<vmem>>, vector<1x128xf32>
    tpu.vector_store %arg2[%c1, %c0_28], %99 {strides = array<i32>} : memref<3x128xf32, #tpu.memory_space<vmem>>, vector<1x128xf32>,
    %cst_29 = arith.constant 0.000000e+00 : f32
    %101 = vector.broadcast %cst_29 : f32 to vector<1x1xf32>
    %102 = vector.extract_strided_slice %74 {offsets = [2, 0], sizes = [1, 1], strides = [1, 1]} : vector<3x3xf32> to vector<1x1xf32>
    %103 = arith.mulf %102, %58 : vector<1x1xf32>
    %104 = arith.addf %101, %103 : vector<1x1xf32>
    %105 = vector.extract_strided_slice %74 {offsets = [2, 1], sizes = [1, 1], strides = [1, 1]} : vector<3x3xf32> to vector<1x1xf32>
    %106 = arith.mulf %105, %73 : vector<1x1xf32>
    %107 = arith.addf %104, %106 : vector<1x1xf32>
    %108 = vector.extract_strided_slice %74 {offsets = [2, 2], sizes = [1, 1], strides = [1, 1]} : vector<3x3xf32> to vector<1x1xf32>
    %109 = arith.mulf %108, %28 : vector<1x1xf32>
    %110 = arith.addf %107, %109 : vector<1x1xf32>
    %111 = vector.shape_cast %110 : vector<1x1xf32> to vector<1x1xf32>
    %112 = vector.broadcast %111 : vector<1x1xf32> to vector<1x128xf32>
    %c2 = arith.constant 2 : index
    %c0_30 = arith.constant 0 : index
    %113 = vector.load %arg2[%c2, %c0_30] : memref<3x128xf32, #tpu.memory_space<vmem>>, vector<1x128xf32>
    tpu.vector_store %arg2[%c2, %c0_30], %112 {strides = array<i32>} : memref<3x128xf32, #tpu.memory_space<vmem>>, vector<1x128xf32>,
    return
  }
}

</mosaic_0001>

<bundles_post_ra>
// kernel: tpu_custom_call.1
= control target key start
LH: loop header
LB: loop body
LE: loop exit
PB: predicated region body
PF: predicated region fallthrough
CT: control target
= control target key end

     0   :  { %7 = vsyncpa [#allocation3], 0  ;;  %s500_s0 = inlined_call_operand.hbm [shape: f32[3,2,32], index: 0, kind: input, shape index: {}]   ;;  %s501_s1 = inlined_call_operand.hbm [shape: f32[3,3], index: 1, kind: input, shape index: {}]   ;;  %s502_s2 = inlined_call_operand.hbm [shape: f32[3,128], index: 2, kind: output, shape index: {}]  }
   0x1   :  { %8 = vsyncpa [#allocation6], 0 }
   0x2   :  { %9 = vsyncpa [#allocation4], 0  ;;  %s14_s11 = sshll.u32 %s500_s0, 4  ;;  %s424_s12 = smov [#allocation2]   ;;  %s15_s11 = int_to_ptr.hbm [resolvable:$true] %s14_s11 }
   0x3   :  { %s16_s13 = sshll.u32 %s424_s12, 4  ;;  %s28_s16 = sshll.u32 %s501_s1, 4  ;;  %s17_s13 = int_to_ptr.vmem [resolvable:$true] %s16_s13  ;;  %s29_s16 = int_to_ptr.hbm [resolvable:$true] %s28_s16 }
   0x4   :  { %s425_s17 = smov 32   ;;  %s426_s18 = smov 2  }
   0x5   :  { %22 = dma.hbm_to_vmem [thread:$0]  %s15_s11, 96, %s17_s13, [#allocation3], %s425_s17, %s425_s17, %s426_s18  }
   0x6   :  { %s427_s19 = smov [#allocation5]  }
   0x7   :  { %s30_s20 = sshll.u32 %s427_s19, 4  ;;  %s31_s20 = int_to_ptr.vmem [resolvable:$true] %s30_s20 }
   0x8   :  { %33 = dma.hbm_to_vmem [thread:$0]  %s29_s16, 64, %s31_s20, [#allocation6]  }
   0x9   :  { %418 = dma.done.wait [#allocation3], 96  }
   0xa   :  { %419 = vsyncadd [#allocation3], 4294967200 }
   0xb   :  { %420 = dma.done.wait [#allocation6], 64  }
   0xc   :  { %421 = vsyncadd [#allocation6], 4294967232  ;;  %v453_v0 = vld [vmem:[#allocation2 + $0x4] sm:$0x3]  ;;  %vm48_vm0 = vcmask 254976   ;;  %s428_s0 = smov 127  }
   0xd   :  { %v455_v1 = vld [vmem:[#allocation2] sm:$0x3]  ;;  %v47_v2 = vmul.f32 %v453_v0, %v453_v0  ;;  %v461_v4 = vld [vmem:[#allocation2 + $0x2] sm:$0x3]  ;;  %s429_s1 = smov 126   ;;  %s431_s21 = smov [#allocation7]  }
   0xe   :  { %v45_v3 = vmul.f32 %v455_v1, %v455_v1  ;;  %v46_v7 = vmul.f32 %v461_v4, %v461_v4  ;;  %s304_s22 = sshll.u32 %s431_s21, 4  ;;  %s306_s25 = sshll.u32 %s502_s2, 4  ;;  %s305_s22 = int_to_ptr.vmem [resolvable:$true] %s304_s22  ;;  %s307_s25 = int_to_ptr.hbm [resolvable:$true] %s306_s25 }
   0xf   :  { %v55_v5 = vsel %vm48_vm0, %v47_v2, 0.0 }
  0x10   :  { %v49_v6 = vsel %vm48_vm0, %v45_v3, 0.0  ;;  %56 = vadd.xlane.f32.xlu1 %v55_v5  ;;  %v52_v8 = vsel %vm48_vm0, %v46_v7, 0.0 }
  0x11   :  { %50 = vadd.xlane.f32.xlu0 %v49_v6 }
  0x19   :  { %53 = vadd.xlane.f32.xlu0 %v52_v8 }
  0x83   :  { %v57_v9 = vpop.xlane.xlu1 %56 }
  0x84   :  { %v51_v10 = vpop.xlane.xlu0 %50  ;;  %328 = vrsqrt.f32 %v57_v9  ;;  %vm89_vm1 = vcmp.eq.f32.partialorder %v57_v9, inf  ;;  %vm91_vm2 = vcmp.eq.f32.partialorder %v57_v9, 0.0  ;;  %v92_v28 = vand.u32 2147483648, %v57_v9 }
  0x85   :  { %330 = vrsqrt.f32 %v51_v10  ;;  %vm65_vm3 = vcmp.eq.f32.partialorder %v51_v10, inf  ;;  %v68_v31 = vand.u32 2147483648, %v51_v10  ;;  %vm67_vm4 = vcmp.eq.f32.partialorder %v51_v10, 0.0 }
  0x8a   :  { %v329_v11 = vpop.eup %328 }
  0x8b   :  { %v331_v12 = vpop.eup %330  ;;  %v83_v13 = vmul.f32 %v329_v11, %v57_v9 }
  0x8c   :  { %v54_v14 = vpop.xlane.xlu0 %53  ;;  %v59_v15 = vmul.f32 %v331_v12, %v51_v10 }
  0x8d   :  { %332 = vrsqrt.f32 %v54_v14  ;;  %v84_v16 = vmul.f32 %v329_v11, %v83_v13  ;;  %vm77_vm5 = vcmp.eq.f32.partialorder %v54_v14, inf  ;;  %v80_v41 = vand.u32 2147483648, %v54_v14 }
  0x8e   :  { %v60_v17 = vmul.f32 %v331_v12, %v59_v15  ;;  %vm79_vm6 = vcmp.eq.f32.partialorder %v54_v14, 0.0 }
  0x8f   :  { %v85_v18 = vmul.f32 0.5, %v84_v16 }
  0x90   :  { %v61_v19 = vmul.f32 0.5, %v60_v17 }
  0x91   :  { %v86_v20 = vsub.f32 1.5, %v85_v18 }
  0x92   :  { %v62_v22 = vsub.f32 1.5, %v61_v19 }
  0x93   :  { %v333_v21 = vpop.eup %332  ;;  %v87_v23 = vmul.f32 %v329_v11, %v86_v20 }
  0x94   :  { %v71_v24 = vmul.f32 %v333_v21, %v54_v14  ;;  %v63_v25 = vmul.f32 %v331_v12, %v62_v22 }
  0x95   :  { %v88_v26 = vmul.f32 %v87_v23, %v57_v9 }
  0x96   :  { %v72_v27 = vmul.f32 %v333_v21, %v71_v24  ;;  %v64_v29 = vmul.f32 %v63_v25, %v51_v10 }
  0x97   :  { %v90_v30 = vsel %vm89_vm1, %v57_v9, %v88_v26 }
  0x98   :  { %v73_v32 = vmul.f32 0.5, %v72_v27  ;;  %v93_v33 = vsel %vm91_vm2, %v92_v28, %v90_v30  ;;  %v66_v34 = vsel %vm65_vm3, %v51_v10, %v64_v29 }
  0x99   :  { %v96_v35 = vmax.f32 %v93_v33, 1e-12  ;;  %v69_v36 = vsel %vm67_vm4, %v68_v31, %v66_v34 }
  0x9a   :  { %v74_v37 = vsub.f32 1.5, %v73_v32  ;;  %v94_v38 = vmax.f32 %v69_v36, 1e-12 }
  0x9b   :  { %334 = vrcp.f32 %v96_v35  ;;  %v138_v61 = vand.u32 2147483648, %v96_v35  ;;  %vm132_vm12 = vweird.f32 %v96_v35  ;;  %v136_v2 = vand.u32 2147483647, %v96_v35 }
  0x9c   :  { %v75_v39 = vmul.f32 %v333_v21, %v74_v37  ;;  %336 = vrcp.f32 %v94_v38  ;;  %v108_v51 = vand.u32 2147483648, %v94_v38  ;;  %v106_v54 = vand.u32 2147483647, %v94_v38 }
  0x9d   :  { %vm102_vm8 = vweird.f32 %v94_v38  ;;  %v139_v10 = vor.u32 1.1754944e-38, %v138_v61  ;;  %vm137_vm1 = vcmp.eq.f32.partialorder %v136_v2, 8.507059e+37 }
  0x9e   :  { %v76_v40 = vmul.f32 %v75_v39, %v54_v14  ;;  %v109_v57 = vor.u32 1.1754944e-38, %v108_v51  ;;  %vm107_vm11 = vcmp.eq.f32.partialorder %v106_v54, 8.507059e+37 }
  0xa0   :  { %v78_v42 = vsel %vm77_vm5, %v54_v14, %v76_v40 }
  0xa1   :  { %v81_v43 = vsel %vm79_vm6, %v80_v41, %v78_v42  ;;  %v335_v44 = vpop.eup %334 }
  0xa2   :  { %v95_v45 = vmax.f32 %v81_v43, 1e-12  ;;  %v337_v46 = vpop.eup %336  ;;  %v128_v47 = vmul.f32 %v335_v44, %v96_v35  ;;  %vm133_vm10 = vweird.f32 %v335_v44 }
  0xa3   :  { %v98_v48 = vmul.f32 %v337_v46, %v94_v38  ;;  %vm103_vm7 = vweird.f32 %v337_v46  ;;  %vm134_vm13 = vmor %vm132_vm12, %vm133_vm10 }
  0xa4   :  { %338 = vrcp.f32 %v95_v45  ;;  %v129_v49 = vsub.f32 1.0, %v128_v47  ;;  %vm104_vm9 = vmor %vm102_vm8, %vm103_vm7  ;;  %v123_v5 = vand.u32 2147483648, %v95_v45  ;;  %v121_v7 = vand.u32 2147483647, %v95_v45 }
  0xa5   :  { %v99_v50 = vsub.f32 1.0, %v98_v48  ;;  %vm117_vm15 = vweird.f32 %v95_v45 }
  0xa6   :  { %v130_v52 = vmul.f32 %v335_v44, %v129_v49  ;;  %v124_v13 = vor.u32 1.1754944e-38, %v123_v5  ;;  %vm122_vm3 = vcmp.eq.f32.partialorder %v121_v7, 8.507059e+37 }
  0xa7   :  { %v100_v53 = vmul.f32 %v337_v46, %v99_v50 }
  0xa8   :  { %v131_v59 = vadd.f32 %v335_v44, %v130_v52 }
  0xa9   :  { %v101_v56 = vadd.f32 %v337_v46, %v100_v53 }
  0xaa   :  { %v339_v55 = vpop.eup %338  ;;  %v135_v8 = vsel %vm134_vm13, %v335_v44, %v131_v59 }
  0xab   :  { %v113_v58 = vmul.f32 %v339_v55, %v95_v45  ;;  %v105_v60 = vsel %vm104_vm9, %v337_v46, %v101_v56  ;;  %vm118_vm14 = vweird.f32 %v339_v55  ;;  %v140_v14 = vsel %vm137_vm1, %v139_v10, %v135_v8 }
  0xac   :  { %v110_v62 = vsel %vm107_vm11, %v109_v57, %v105_v60  ;;  %vm119_vm2 = vmor %vm117_vm15, %vm118_vm14  ;;  %v141_v17 = vmul.f32 %v140_v14, %v453_v0  ;;  %v477_v0 = vld [vmem:[#allocation5] sm:$0x7] }
  0xad   :  { %v114_v63 = vsub.f32 1.0, %v113_v58  ;;  %v111_v3 = vmul.f32 %v110_v62, %v455_v1  ;;  %v480_v27 = vmul.f32 1e-06, %v477_v0 }
  0xae   :  { %v152_v24 = vmul.f32 %v141_v17, %v141_v17 }
  0xaf   :  { %v115_v6 = vmul.f32 %v339_v55, %v114_v63  ;;  %v142_v9 = vmul.f32 %v111_v3, %v111_v3  ;;  %v187_v26 = vmul.f32 %v141_v17, %v111_v3 }
  0xb0   :  { %v153_v25 = vsel %vm48_vm0, %v152_v24, 0.0 }
  0xb1   :  { %v116_v11 = vadd.f32 %v339_v55, %v115_v6  ;;  %v143_v12 = vsel %vm48_vm0, %v142_v9, 0.0 }
  0xb2   :  { %144 = vadd.xlane.f32.xlu1 %v143_v12 }
  0xb3   :  { %v120_v15 = vsel %vm119_vm2, %v339_v55, %v116_v11 }
  0xb4   :  { %v125_v1 = vsel %vm122_vm3, %v124_v13, %v120_v15 }
  0xb5   :  { %v126_v16 = vmul.f32 %v125_v1, %v461_v4  ;;  %v188_v4 = vsel %vm48_vm0, %v187_v26, 0.0 }
  0xb7   :  { %v216_v18 = vmul.f32 %v141_v17, %v126_v16  ;;  %v157_v19 = vmul.f32 %v126_v16, %v111_v3  ;;  %v147_v20 = vmul.f32 %v126_v16, %v126_v16 }
  0xb9   :  { %v217_v21 = vsel %vm48_vm0, %v216_v18, 0.0  ;;  %v158_v22 = vsel %vm48_vm0, %v157_v19, 0.0  ;;  %v148_v23 = vsel %vm48_vm0, %v147_v20, 0.0  ;;  %vm165_vm0 = vcmask 1041408  }
  0xba   :  { %159 = vadd.xlane.f32.xlu0 %v158_v22  ;;  %149 = vadd.xlane.f32.xlu2 %v148_v23 }
  0xbb   :  { %218 = vadd.xlane.f32.xlu1 %v217_v21 }
  0xc2   :  { %154 = vadd.xlane.f32.xlu2 %v153_v25 }
  0xca   :  { %189 = vadd.xlane.f32.xlu2 %v188_v4 }
  0xd4   :  { %268 = vrot.lane.b32.xlu1 %v480_v27, %s428_s0 }
  0xdc   :  { %289 = vrot.lane.b32.xlu1 %v480_v27, %s429_s1 }
 0x125   :  { %v145_v28 = vpop.xlane.xlu1 %144 }
 0x126   :  { %v146_v31 = vmul.f32 %v145_v28, %v145_v28 }
 0x12d   :  { %v160_v29 = vpop.xlane.xlu0 %159  ;;  %v150_v30 = vpop.xlane.xlu2 %149 }
 0x12e   :  { %v162_v32 = vmul.f32 %v160_v29, %v160_v29  ;;  %v151_v33 = vmul.f32 %v150_v30, %v150_v30  ;;  %v219_v36 = vpop.xlane.xlu1 %218 }
 0x12f   :  { %v221_v38 = vmul.f32 %v219_v36, %v219_v36 }
 0x130   :  { %v163_v34 = vmul.f32 2.0, %v162_v32  ;;  %v161_v35 = vadd.f32 %v151_v33, %v146_v31 }
 0x131   :  { %v222_v44 = vmul.f32 2.0, %v221_v38 }
 0x132   :  { %v164_v37 = vsub.f32 %v161_v35, %v163_v34 }
 0x134   :  { %v166_v39 = vsel %vm165_vm0, %v164_v37, 0.0 }
 0x135   :  { %v167_v40 = vrot.slane %v166_v39, 4  ;;  %v155_v41 = vpop.xlane.xlu2 %154 }
 0x136   :  { %v156_v42 = vmul.f32 %v155_v41, %v155_v41 }
 0x137   :  { %v168_v43 = vadd.f32 %v167_v40, %v166_v39 }
 0x138   :  { %v220_v45 = vadd.f32 %v156_v42, %v151_v33  ;;  %v191_v56 = vadd.f32 %v156_v42, %v146_v31 }
 0x139   :  { %v169_v46 = vrot.slane %v168_v43, 2 }
 0x13a   :  { %v223_v47 = vsub.f32 %v220_v45, %v222_v44 }
 0x13b   :  { %v170_v48 = vadd.f32 %v169_v46, %v168_v43 }
 0x13c   :  { %v224_v49 = vsel %vm165_vm0, %v223_v47, 0.0  ;;  %v430_v47 = vmov 0  }
 0x13d   :  { %v171_v50 = vrot.slane %v170_v48, 1  ;;  %v225_v51 = vrot.slane %v224_v49, 4  ;;  %v190_v52 = vpop.xlane.xlu2 %189  ;;  %327 = vset.pattern.permute.xlu1 %v430_v47  ;;  %326 = vset.pattern.permute.xlu2 %v430_v47 }
 0x13e   :  { %v192_v53 = vmul.f32 %v190_v52, %v190_v52  ;;  %325 = vset.pattern.permute.xlu0 %v430_v47 }
 0x13f   :  { %v172_v54 = vadd.f32 %v171_v50, %v170_v48  ;;  %v226_v55 = vadd.f32 %v225_v51, %v224_v49 }
 0x140   :  { %v193_v57 = vmul.f32 2.0, %v192_v53 }
 0x141   :  { %v173_v58 = vmax.f32 %v172_v54, 0.0  ;;  %v227_v59 = vrot.slane %v226_v55, 2 }
 0x142   :  { %v194_v60 = vsub.f32 %v191_v56, %v193_v57 }
 0x143   :  { %v174_v61 = vadd.f32 1e-12, %v173_v58  ;;  %v228_v62 = vadd.f32 %v227_v59, %v226_v55 }
 0x144   :  { %v195_v63 = vsel %vm165_vm0, %v194_v60, 0.0 }
 0x145   :  { %v229_v2 = vrot.slane %v228_v62, 1  ;;  %v196_v3 = vrot.slane %v195_v63, 4  ;;  %340 = vrsqrt.f32 %v174_v61  ;;  %vm182_vm4 = vcmp.eq.f32.partialorder %v174_v61, inf }
 0x146   :  { %v185_v24 = vand.u32 2147483648, %v174_v61  ;;  %vm184_vm5 = vcmp.eq.f32.partialorder %v174_v61, 0.0  ;;  %v269_v48 = vpop.permute.xlu1 %268 }
 0x147   :  { %v230_v5 = vadd.f32 %v229_v2, %v228_v62  ;;  %v197_v6 = vadd.f32 %v196_v3, %v195_v63 }
 0x149   :  { %v231_v7 = vmax.f32 %v230_v5, 0.0  ;;  %v198_v8 = vrot.slane %v197_v6, 2 }
 0x14b   :  { %v341_v9 = vpop.eup %340  ;;  %v232_v10 = vadd.f32 1e-12, %v231_v7  ;;  %v199_v11 = vadd.f32 %v198_v8, %v197_v6 }
 0x14c   :  { %v176_v12 = vmul.f32 %v341_v9, %v174_v61 }
 0x14d   :  { %v200_v13 = vrot.slane %v199_v11, 1  ;;  %342 = vrsqrt.f32 %v232_v10  ;;  %vm240_vm6 = vcmp.eq.f32.partialorder %v232_v10, inf  ;;  %v243_v35 = vand.u32 2147483648, %v232_v10 }
 0x14e   :  { %v177_v14 = vmul.f32 %v341_v9, %v176_v12  ;;  %vm242_vm7 = vcmp.eq.f32.partialorder %v232_v10, 0.0  ;;  %v290_v50 = vpop.permute.xlu1 %289 }
 0x14f   :  { %v201_v15 = vadd.f32 %v200_v13, %v199_v11 }
 0x150   :  { %v178_v1 = vmul.f32 0.5, %v177_v14 }
 0x151   :  { %v202_v16 = vmax.f32 %v201_v15, 0.0 }
 0x152   :  { %v179_v17 = vsub.f32 1.5, %v178_v1 }
 0x153   :  { %v343_v18 = vpop.eup %342  ;;  %v203_v19 = vadd.f32 1e-12, %v202_v16 }
 0x154   :  { %v180_v20 = vmul.f32 %v341_v9, %v179_v17  ;;  %v234_v21 = vmul.f32 %v343_v18, %v232_v10 }
 0x155   :  { %344 = vrsqrt.f32 %v203_v19  ;;  %vm211_vm8 = vcmp.eq.f32.partialorder %v203_v19, inf  ;;  %v214_v43 = vand.u32 2147483648, %v203_v19  ;;  %vm213_vm9 = vcmp.eq.f32.partialorder %v203_v19, 0.0 }
 0x156   :  { %v181_v22 = vmul.f32 %v180_v20, %v174_v61  ;;  %v235_v23 = vmul.f32 %v343_v18, %v234_v21 }
 0x158   :  { %v183_v25 = vsel %vm182_vm4, %v174_v61, %v181_v22  ;;  %v236_v26 = vmul.f32 0.5, %v235_v23 }
 0x159   :  { %v186_v4 = vsel %vm184_vm5, %v185_v24, %v183_v25 }
 0x15a   :  { %v248_v28 = vmul.f32 %v477_v0, %v186_v4  ;;  %v237_v29 = vsub.f32 1.5, %v236_v26 }
 0x15b   :  { %v345_v30 = vpop.eup %344 }
 0x15c   :  { %250 = vrot.lane.b32.xlu0 %v248_v28, %s428_s0  ;;  %v238_v31 = vmul.f32 %v343_v18, %v237_v29  ;;  %v205_v32 = vmul.f32 %v345_v30, %v203_v19  ;;  %v271_v53 = vadd.f32 %v269_v48, %v248_v28 }
 0x15e   :  { %v239_v33 = vmul.f32 %v238_v31, %v232_v10  ;;  %v206_v34 = vmul.f32 %v345_v30, %v205_v32 }
 0x160   :  { %v241_v36 = vsel %vm240_vm6, %v232_v10, %v239_v33  ;;  %v207_v37 = vmul.f32 0.5, %v206_v34 }
 0x161   :  { %v244_v38 = vsel %vm242_vm7, %v243_v35, %v241_v36 }
 0x162   :  { %v272_v39 = vmul.f32 %v477_v0, %v244_v38  ;;  %v208_v40 = vsub.f32 1.5, %v207_v37 }
 0x164   :  { %285 = vrot.lane.b32.xlu2 %v272_v39, %s428_s0  ;;  %v209_v41 = vmul.f32 %v345_v30, %v208_v40 }
 0x166   :  { %v210_v42 = vmul.f32 %v209_v41, %v203_v19 }
 0x168   :  { %v212_v44 = vsel %vm211_vm8, %v203_v19, %v210_v42 }
 0x169   :  { %v215_v45 = vsel %vm213_vm9, %v214_v43, %v212_v44 }
 0x16a   :  { %v254_v46 = vmul.f32 %v477_v0, %v215_v45 }
 0x16c   :  { %274 = vrot.lane.b32.xlu2 %v272_v39, %s429_s1  ;;  %256 = vrot.lane.b32.xlu0 %v254_v46, %s429_s1 }
 0x1be   :  { %v286_v49 = vpop.permute.xlu2 %285 }
 0x1bf   :  { %v288_v51 = vadd.f32 %v286_v49, %v254_v46 }
 0x1c1   :  { %v292_v52 = vadd.f32 %v290_v50, %v288_v51 }
 0x1c3   :  { %295 = vperm.xlu1 %327, %v292_v52  }
 0x1c6   :  { %v275_v54 = vpop.permute.xlu2 %274 }
 0x1c7   :  { %v277_v55 = vadd.f32 %v275_v54, %v271_v53 }
 0x1c9   :  { %280 = vperm.xlu2 %326, %v277_v55  }
 0x1ce   :  { %v251_v56 = vpop.permute.xlu0 %250 }
 0x1cf   :  { %v253_v0 = vadd.f32 %v251_v56, %v480_v27 }
 0x1de   :  { %v257_v57 = vpop.permute.xlu0 %256 }
 0x1df   :  { %v259_v58 = vadd.f32 %v257_v57, %v253_v0 }
 0x1e1   :  { %262 = vperm.xlu0 %325, %v259_v58  }
 0x223   :  { %v281_v59 = vpop.permute.xlu2 %280 }
 0x224   :  { %283 = vst [vmem:[#allocation7] sm:$0x2] %v281_v59 }
 0x235   :  { %v296_v60 = vpop.permute.xlu1 %295 }
 0x236   :  { %298 = vst [vmem:[#allocation7] sm:$0x4] %v296_v60 }
 0x253   :  { %v263_v61 = vpop.permute.xlu0 %262 }
 0x254   :  { %265 = vst [vmem:[#allocation7] sm:$0x1] %v263_v61 }
 0x255   :  { %309 = dma.vmem_to_hbm [thread:$0]  %s305_s22, 64, %s307_s25, [#allocation4]  }
 0x256   :  { %422 = dma.done.wait [#allocation4], 64  }
 0x257   :  { %423 = vsyncadd [#allocation4], 4294967232 }
 0x258   :  { %314 = vsyncpa [#allocation3], 1 }
 0x259   :  { %315 = vsyncpa [#allocation6], 1 }
 0x25a   :  { %316 = vsyncpa [#allocation4], 1 }

</bundles_post_ra>
